<compile_context>
chip_gen: v7x
topology: tpu7x:2x2x1
jax: 0.10.0
libtpu: 0.0.40
codegen_flags: <defaults>
</compile_context>

<pallas_src>
import functools
import math

import jax
import jax.numpy as jnp
import numpy as np
from jax import lax
from jax.experimental import pallas as pl
from jax.experimental.pallas import tpu as pltpu

# MXU-operand dtype.  bf16 inputs with f32 accumulation are the fast path on every
# generation (v5e 197 TF/s, v6e 918 TF/s, v7x 996 TF/s) and halve weight VMEM/DMA.
# All element-wise math (softmax, LayerNorm, residuals, masks) stays in f32.
# Set to jnp.float32 for bit-accurate verification (test tolerance tightens to 5e-3).
MATMUL_DTYPE = jnp.bfloat16

LANE = 128
NEG_INF = -1e9


def _layer_norm(z, gamma, beta, inv_d):
    """LayerNorm over the channel axis of a lane-padded (M, Dp) tile.

    Padded channels of `z` are exactly zero and gamma/beta are zero-padded, so
    full-lane sums * 1/D give the mean/var over the D valid channels and padded
    output channels come out as beta == 0.  One-pass variance avoids a channel mask.
    """
    mu = jnp.sum(z, axis=-1, keepdims=True) * inv_d
    var = jnp.sum(z * z, axis=-1, keepdims=True) * inv_d - mu * mu
    return (z - mu) * lax.rsqrt(var + 1e-5) * gamma + beta


def transformer_kernel(x_ref, keep_ref, bias_ref,
                       wqkv_ref, bqkv_ref, wo_ref, bo_ref,
                       g1_ref, be1_ref, wff_ref, bff_ref, g2_ref, be2_ref,
                       out_ref, *, num_heads, head_dim, d_model):
    f32 = jnp.float32
    D = d_model

    keep = keep_ref[...]                       # (M, 1)  1.0 on valid (non-padded) rows
    x = x_ref[...] * keep                      # (M, Dp) x.masked_fill(mask, 0)

    # ---- fused QKV projection (1/sqrt(head_dim) pre-folded into the Q columns) ----
    qkv = jnp.dot(x.astype(MATMUL_DTYPE), wqkv_ref[...],
                  preferred_element_type=f32) + bqkv_ref[...]          # (M, 3D) f32

    # ---- multi-head attention: per-head head_dim-wide contractions (no padding
    #      waste, no permutation matmuls).  H is small & static → unrolled loop;
    #      for large H/L put heads (and KV blocks) on the grid instead. ----
    bias = bias_ref[...]                       # (M, M) additive: key-padding + cross-batch
    head_outs = []
    for h in range(num_heads):
        lo = h * head_dim
        qh = qkv[:, lo:lo + head_dim].astype(MATMUL_DTYPE)             # (M, hd)
        kh = qkv[:, D + lo:D + lo + head_dim].astype(MATMUL_DTYPE)     # (M, hd)
        vh = qkv[:, 2 * D + lo:2 * D + lo + head_dim].astype(MATMUL_DTYPE)

        s = lax.dot_general(qh, kh, (((1,), (1,)), ((), ())),
                            preferred_element_type=f32) + bias         # (M, M) f32
        # Numerically-stable softmax along lanes; EUP approx reciprocal (free slot).
        s = s - jnp.max(s, axis=-1, keepdims=True)
        p = jnp.exp(s)
        p = p * pl.reciprocal(jnp.sum(p, axis=-1, keepdims=True), approx=True)

        head_outs.append(jnp.dot(p.astype(MATMUL_DTYPE), vh,
                                 preferred_element_type=f32))          # (M, hd)
    attn = jnp.concatenate(head_outs, axis=1)                          # (M, D)

    # ---- output projection + residual / LN / FFN / LN ----
    y = jnp.dot(attn.astype(MATMUL_DTYPE), wo_ref[...],
                preferred_element_type=f32) + bo_ref[...]              # (M, Dp)
    y = y * keep                                                       # y.masked_fill(mask, 0)

    inv_d = 1.0 / D
    ln_y = _layer_norm(y + x, g1_ref[...], be1_ref[...], inv_d)
    ff = jnp.maximum(
        jnp.dot(ln_y.astype(MATMUL_DTYPE), wff_ref[...],
                preferred_element_type=f32) + bff_ref[...], 0.0)
    out = _layer_norm(ln_y + ff, g2_ref[...], be2_ref[...], inv_d)
    out_ref[...] = out.astype(out_ref.dtype)


def transformer_forward(x, mask, params, num_heads, batch_per_step=1):
    """x: (L, N, D) float32; mask: (N, L) bool (True = padded).  Returns ((L, N, D), mask).

    batch_per_step: batches folded into one grid step.  Choose it so M = NB*L is a
    multiple of 128 and H*M^2*4 bytes (+ intermediates) fits the generation's VMEM
    (use roughly half on v7x, 64 MiB/TC).  Default 1 keeps >= 2 parallel grid steps.
    """
    L, N, D = x.shape
    assert D % num_heads == 0
    head_dim = D // num_heads
    Dp = ((D + LANE - 1) // LANE) * LANE           # lane-padded d_model
    NB = batch_per_step
    assert N % NB == 0
    steps = N // NB
    M = NB * L                                     # rows per grid step

    f32 = jnp.float32

    # (L, N, D) -> (N*L, Dp) with zero-padded channels (lane-dense input & output).
    xb = jnp.transpose(x, (1, 0, 2)).reshape(N * L, D).astype(f32)
    xb = jnp.pad(xb, ((0, 0), (0, Dp - D)))

    maskf = mask.astype(f32)                       # (N, L), 1.0 on padded positions
    keepcol = (1.0 - maskf).reshape(N * L, 1)      # narrow keep column (broadcast in-kernel)

    # Per-step additive attention bias: key-padding + cross-batch (batch folded into M).
    mrow = maskf.reshape(steps, M)                                       # (steps, M)
    kpm = mrow[:, None, :] * NEG_INF                                     # (steps, 1, M)
    row_batch = jnp.arange(M, dtype=jnp.int32) // L
    cross = jnp.where(row_batch[:, None] == row_batch[None, :], 0.0, NEG_INF)  # (M, M)
    bias = (kpm + cross[None]).reshape(steps * M, M)                     # (steps*M, M)

    scale = 1.0 / math.sqrt(head_dim)

    def pad2(a, rows, cols):
        a = jnp.asarray(a, f32)
        return jnp.pad(a, ((0, rows - a.shape[0]), (0, cols - a.shape[1])))

    # Fused QKV weight (Dp, 3D), q columns pre-scaled; MXU weights cast once to bf16.
    wqkv = jnp.concatenate([pad2(params["wq"] * scale, Dp, D),
                            pad2(params["wk"], Dp, D),
                            pad2(params["wv"], Dp, D)], axis=1).astype(MATMUL_DTYPE)
    bqkv = jnp.concatenate([params["bq"] * scale, params["bk"], params["bv"]],
                           axis=1).astype(f32)                            # (1, 3D)
    wo = pad2(params["wo"], D, Dp).astype(MATMUL_DTYPE)                   # (D, Dp)
    bo = pad2(params["bo"], 1, Dp)
    g1, be1 = pad2(params["g1"], 1, Dp), pad2(params["be1"], 1, Dp)
    wff = pad2(params["wff"], Dp, Dp).astype(MATMUL_DTYPE)
    bff = pad2(params["bff"], 1, Dp)
    g2, be2 = pad2(params["g2"], 1, Dp), pad2(params["be2"], 1, Dp)

    kern = functools.partial(transformer_kernel, num_heads=num_heads,
                             head_dim=head_dim, d_model=D)

    row_spec = pl.BlockSpec((M, Dp), lambda i: (i, 0))

    def full(a):  # grid-invariant weights/biases (resident; negligible VMEM at this Dp)
        return pl.BlockSpec(a.shape, lambda i: (0, 0))

    in_specs = [
        row_spec,                                   # x (lane-dense)
        pl.BlockSpec((M, 1), lambda i: (i, 0)),     # keep column (1 f32 per row)
        pl.BlockSpec((M, M), lambda i: (i, 0)),     # per-step additive attention bias
        full(wqkv), full(bqkv), full(wo), full(bo),
        full(g1), full(be1), full(wff), full(bff), full(g2), full(be2),
    ]

    out = pl.pallas_call(
        kern,
        out_shape=jax.ShapeDtypeStruct((N * L, Dp), f32),
        grid_spec=pltpu.PrefetchScalarGridSpec(
            num_scalar_prefetch=0,
            grid=(steps,),
            in_specs=in_specs,
            out_specs=row_spec,
        ),
        compiler_params=pltpu.CompilerParams(
            dimension_semantics=("parallel",),
            vmem_limit_bytes=32 * 1024 * 1024),
    )(xb, keepcol, bias, wqkv, bqkv, wo, bo, g1, be1, wff, bff, g2, be2)

    y = out[:, :D].reshape(N, L, D)
    return jnp.transpose(y, (1, 0, 2)), mask


def reference_forward(x, mask, params, num_heads):
    """Pure-JAX reference (same math, no Pallas)."""
    L, N, D = x.shape
    hd = D // num_heads
    xb = jnp.transpose(x, (1, 0, 2))
    mf = mask.astype(jnp.float32)
    keep = 1.0 - mf[:, :, None]
    xb = xb * keep
    q = xb @ params["wq"] + params["bq"]
    k = xb @ params["wk"] + params["bk"]
    v = xb @ params["wv"] + params["bv"]
    qh = q.reshape(N, L, num_heads, hd).transpose(0, 2, 1, 3)
    kh = k.reshape(N, L, num_heads, hd).transpose(0, 2, 1, 3)
    vh = v.reshape(N, L, num_heads, hd).transpose(0, 2, 1, 3)
    s = jnp.einsum("nhqd,nhkd->nhqk", qh, kh) / math.sqrt(hd)
    s = s + (mf * NEG_INF)[:, None, None, :]
    p = jax.nn.softmax(s, axis=-1)
    o = jnp.einsum("nhqk,nhkd->nhqd", p, vh).transpose(0, 2, 1, 3).reshape(N, L, D)
    y = (o @ params["wo"] + params["bo"]) * keep

    def ln(z, g, b):
        mu = z.mean(-1, keepdims=True)
        var = ((z - mu) ** 2).mean(-1, keepdims=True)
        return (z - mu) * jax.lax.rsqrt(var + 1e-5) * g + b

    ln_y = ln(y + xb, params["g1"], params["be1"])
    ff = jax.nn.relu(ln_y @ params["wff"] + params["bff"])
    out = ln(ln_y + ff, params["g2"], params["be2"])
    return jnp.transpose(out, (1, 0, 2))


def init_params(key, d_model):
    ks = jax.random.split(key, 12)
    s = 0.1
    w = lambda k: (jax.random.normal(k, (d_model, d_model), jnp.float32) * s)
    b = lambda k: (jax.random.normal(k, (1, d_model), jnp.float32) * s)
    return {
        "wq": w(ks[0]), "bq": b(ks[1]),
        "wk": w(ks[2]), "bk": b(ks[3]),
        "wv": w(ks[4]), "bv": b(ks[5]),
        "wo": w(ks[6]), "bo": b(ks[7]),
        "g1": jnp.ones((1, d_model), jnp.float32),
        "be1": jnp.zeros((1, d_model), jnp.float32),
        "wff": w(ks[8]), "bff": b(ks[9]),
        "g2": jnp.ones((1, d_model), jnp.float32),
        "be2": jnp.zeros((1, d_model), jnp.float32),
    }


if __name__ == "__main__":
    # small shapes: seq L=8, batch N=2, d_model D=32, heads H=4 (head_dim=8)
    L, N, D, H = 8, 2, 32, 4
    key = jax.random.PRNGKey(0)
    kx, kp = jax.random.split(key)

    x = jax.random.normal(kx, (L, N, D), jnp.float32)
    # key-padding mask: batch 0 has no padding, batch 1 pads positions >= 5
    lens = jnp.array([L, 5])
    mask = jnp.arange(L)[None, :] >= lens[:, None]          # (N, L) bool

    params = init_params(kp, D)

    (y, mask_out) = transformer_forward(x, mask, params, H)
    y = jax.block_until_ready(y)

    y_ref = reference_forward(x, mask, params, H)
    # Tolerance budget: bf16 MXU operands (f32 accumulation) contribute ~1e-2
    # absolute deviation through the two LayerNorms at these scales, plus ~1e-3
    # relative from the EUP approximate reciprocal in the softmax normalization.
    tol = 5e-3 if MATMUL_DTYPE == jnp.float32 else 3e-2
    np.testing.assert_allclose(np.asarray(y), np.asarray(y_ref), rtol=tol, atol=tol)

    print("KERNEL_OK")
</pallas_src>

<mosaic_0001>
module attributes {stable_mosaic.version = 11 : i64} {
  func.func @transformer_kernel(%arg0: i32, %arg1: memref<8x128xf32, #tpu.memory_space<vmem>>, %arg2: memref<8x1xf32, #tpu.memory_space<vmem>>, %arg3: memref<8x8xf32, #tpu.memory_space<vmem>>, %arg4: memref<128x96xbf16, #tpu.memory_space<vmem>>, %arg5: memref<1x96xf32, #tpu.memory_space<vmem>>, %arg6: memref<32x128xbf16, #tpu.memory_space<vmem>>, %arg7: memref<1x128xf32, #tpu.memory_space<vmem>>, %arg8: memref<1x128xf32, #tpu.memory_space<vmem>>, %arg9: memref<1x128xf32, #tpu.memory_space<vmem>>, %arg10: memref<128x128xbf16, #tpu.memory_space<vmem>>, %arg11: memref<1x128xf32, #tpu.memory_space<vmem>>, %arg12: memref<1x128xf32, #tpu.memory_space<vmem>>, %arg13: memref<1x128xf32, #tpu.memory_space<vmem>>, %arg14: memref<8x128xf32, #tpu.memory_space<vmem>>) attributes {dimension_semantics = [#tpu.dimension_semantics<parallel>], iteration_bounds = array<i64: 2>, scalar_prefetch = 0 : i64, scratch_operands = 0 : i64, tpu.core_type = #tpu.core_type<tc>, window_params = [{transform_indices = @transform_0, window_bounds = array<i64: 8, 128>}, {transform_indices = @transform_1, window_bounds = array<i64: 8, 1>}, {transform_indices = @transform_2, window_bounds = array<i64: 8, 8>}, {pipeline_mode = #tpu.pipeline_mode<synchronous>, transform_indices = @transform_3, window_bounds = array<i64: 128, 96>}, {pipeline_mode = #tpu.pipeline_mode<synchronous>, transform_indices = @transform_4, window_bounds = array<i64: 1, 96>}, {pipeline_mode = #tpu.pipeline_mode<synchronous>, transform_indices = @transform_5, window_bounds = array<i64: 32, 128>}, {pipeline_mode = #tpu.pipeline_mode<synchronous>, transform_indices = @transform_6, window_bounds = array<i64: 1, 128>}, {pipeline_mode = #tpu.pipeline_mode<synchronous>, transform_indices = @transform_7, window_bounds = array<i64: 1, 128>}, {pipeline_mode = #tpu.pipeline_mode<synchronous>, transform_indices = @transform_8, window_bounds = array<i64: 1, 128>}, {pipeline_mode = #tpu.pipeline_mode<synchronous>, transform_indices = @transform_9, window_bounds = array<i64: 128, 128>}, {pipeline_mode = #tpu.pipeline_mode<synchronous>, transform_indices = @transform_10, window_bounds = array<i64: 1, 128>}, {pipeline_mode = #tpu.pipeline_mode<synchronous>, transform_indices = @transform_11, window_bounds = array<i64: 1, 128>}, {pipeline_mode = #tpu.pipeline_mode<synchronous>, transform_indices = @transform_12, window_bounds = array<i64: 1, 128>}, {transform_indices = @transform_13, window_bounds = array<i64: 8, 128>}]} {
    %c0 = arith.constant 0 : index
    %c0_0 = arith.constant 0 : index
    %0 = vector.load %arg2[%c0, %c0_0] : memref<8x1xf32, #tpu.memory_space<vmem>>, vector<8x1xf32>
    %c0_1 = arith.constant 0 : index
    %c0_2 = arith.constant 0 : index
    %1 = vector.load %arg1[%c0_1, %c0_2] : memref<8x128xf32, #tpu.memory_space<vmem>>, vector<8x128xf32>
    %2 = vector.broadcast %0 : vector<8x1xf32> to vector<8x128xf32>
    %3 = arith.mulf %1, %2 : vector<8x128xf32>
    %4 = arith.truncf %3 : vector<8x128xf32> to vector<8x128xbf16>
    %c0_3 = arith.constant 0 : index
    %c0_4 = arith.constant 0 : index
    %5 = vector.load %arg4[%c0_3, %c0_4] : memref<128x96xbf16, #tpu.memory_space<vmem>>, vector<128x96xbf16>
    %cst = arith.constant dense<0.000000e+00> : vector<8x96xf32>
    %6 = tpu.matmul %4, %5, %cst {dimension_numbers = #tpu.dot_dimension_numbers<[1], [0], [0], [1], [0, 0, 1, 1], [], []>} : vector<8x128xbf16>, vector<128x96xbf16>, vector<8x96xf32> -> vector<8x96xf32>
    %c0_5 = arith.constant 0 : index
    %c0_6 = arith.constant 0 : index
    %7 = vector.load %arg5[%c0_5, %c0_6] : memref<1x96xf32, #tpu.memory_space<vmem>>, vector<1x96xf32>
    %8 = vector.broadcast %7 : vector<1x96xf32> to vector<8x96xf32>
    %9 = arith.addf %6, %8 : vector<8x96xf32>
    %c0_7 = arith.constant 0 : index
    %c0_8 = arith.constant 0 : index
    %10 = vector.load %arg3[%c0_7, %c0_8] : memref<8x8xf32, #tpu.memory_space<vmem>>, vector<8x8xf32>
    %11 = vector.extract_strided_slice %9 {offsets = [0, 0], sizes = [8, 8], strides = [1, 1]} : vector<8x96xf32> to vector<8x8xf32>
    %12 = arith.truncf %11 : vector<8x8xf32> to vector<8x8xbf16>
    %13 = vector.extract_strided_slice %9 {offsets = [0, 32], sizes = [8, 8], strides = [1, 1]} : vector<8x96xf32> to vector<8x8xf32>
    %14 = arith.truncf %13 : vector<8x8xf32> to vector<8x8xbf16>
    %15 = vector.extract_strided_slice %9 {offsets = [0, 64], sizes = [8, 8], strides = [1, 1]} : vector<8x96xf32> to vector<8x8xf32>
    %16 = arith.truncf %15 : vector<8x8xf32> to vector<8x8xbf16>
    %cst_9 = arith.constant dense<0.000000e+00> : vector<8x8xf32>
    %17 = tpu.matmul %12, %14, %cst_9 {dimension_numbers = #tpu.dot_dimension_numbers<[1], [1], [0], [0], [0, 0, 1, 0], [], []>} : vector<8x8xbf16>, vector<8x8xbf16>, vector<8x8xf32> -> vector<8x8xf32>
    %18 = arith.addf %17, %10 : vector<8x8xf32>
    %cst_10 = arith.constant dense<0xFF800000> : vector<8xf32>
    %19 = vector.multi_reduction <maximumf>, %18, %cst_10 [1] : vector<8x8xf32> to vector<8xf32>
    %20 = vector.shape_cast %19 : vector<8xf32> to vector<8x1xf32>
    %21 = vector.broadcast %20 : vector<8x1xf32> to vector<8x8xf32>
    %22 = arith.subf %18, %21 : vector<8x8xf32>
    %23 = math.exp %22 : vector<8x8xf32>
    %cst_11 = arith.constant dense<0.000000e+00> : vector<8xf32>
    %24 = vector.multi_reduction <add>, %23, %cst_11 [1] : vector<8x8xf32> to vector<8xf32>
    %25 = vector.shape_cast %24 : vector<8xf32> to vector<8x1xf32>
    %26 = tpu.reciprocal %25 {approx = true} : vector<8x1xf32> -> vector<8x1xf32>
    %27 = vector.broadcast %26 : vector<8x1xf32> to vector<8x8xf32>
    %28 = arith.mulf %23, %27 : vector<8x8xf32>
    %29 = arith.truncf %28 : vector<8x8xf32> to vector<8x8xbf16>
    %cst_12 = arith.constant dense<0.000000e+00> : vector<8x8xf32>
    %30 = tpu.matmul %29, %16, %cst_12 {dimension_numbers = #tpu.dot_dimension_numbers<[1], [0], [0], [1], [0, 0, 1, 1], [], []>} : vector<8x8xbf16>, vector<8x8xbf16>, vector<8x8xf32> -> vector<8x8xf32>
    %31 = vector.extract_strided_slice %9 {offsets = [0, 8], sizes = [8, 8], strides = [1, 1]} : vector<8x96xf32> to vector<8x8xf32>
    %32 = arith.truncf %31 : vector<8x8xf32> to vector<8x8xbf16>
    %33 = vector.extract_strided_slice %9 {offsets = [0, 40], sizes = [8, 8], strides = [1, 1]} : vector<8x96xf32> to vector<8x8xf32>
    %34 = arith.truncf %33 : vector<8x8xf32> to vector<8x8xbf16>
    %35 = vector.extract_strided_slice %9 {offsets = [0, 72], sizes = [8, 8], strides = [1, 1]} : vector<8x96xf32> to vector<8x8xf32>
    %36 = arith.truncf %35 : vector<8x8xf32> to vector<8x8xbf16>
    %cst_13 = arith.constant dense<0.000000e+00> : vector<8x8xf32>
    %37 = tpu.matmul %32, %34, %cst_13 {dimension_numbers = #tpu.dot_dimension_numbers<[1], [1], [0], [0], [0, 0, 1, 0], [], []>} : vector<8x8xbf16>, vector<8x8xbf16>, vector<8x8xf32> -> vector<8x8xf32>
    %38 = arith.addf %37, %10 : vector<8x8xf32>
    %cst_14 = arith.constant dense<0xFF800000> : vector<8xf32>
    %39 = vector.multi_reduction <maximumf>, %38, %cst_14 [1] : vector<8x8xf32> to vector<8xf32>
    %40 = vector.shape_cast %39 : vector<8xf32> to vector<8x1xf32>
    %41 = vector.broadcast %40 : vector<8x1xf32> to vector<8x8xf32>
    %42 = arith.subf %38, %41 : vector<8x8xf32>
    %43 = math.exp %42 : vector<8x8xf32>
    %cst_15 = arith.constant dense<0.000000e+00> : vector<8xf32>
    %44 = vector.multi_reduction <add>, %43, %cst_15 [1] : vector<8x8xf32> to vector<8xf32>
    %45 = vector.shape_cast %44 : vector<8xf32> to vector<8x1xf32>
    %46 = tpu.reciprocal %45 {approx = true} : vector<8x1xf32> -> vector<8x1xf32>
    %47 = vector.broadcast %46 : vector<8x1xf32> to vector<8x8xf32>
    %48 = arith.mulf %43, %47 : vector<8x8xf32>
    %49 = arith.truncf %48 : vector<8x8xf32> to vector<8x8xbf16>
    %cst_16 = arith.constant dense<0.000000e+00> : vector<8x8xf32>
    %50 = tpu.matmul %49, %36, %cst_16 {dimension_numbers = #tpu.dot_dimension_numbers<[1], [0], [0], [1], [0, 0, 1, 1], [], []>} : vector<8x8xbf16>, vector<8x8xbf16>, vector<8x8xf32> -> vector<8x8xf32>
    %51 = vector.extract_strided_slice %9 {offsets = [0, 16], sizes = [8, 8], strides = [1, 1]} : vector<8x96xf32> to vector<8x8xf32>
    %52 = arith.truncf %51 : vector<8x8xf32> to vector<8x8xbf16>
    %53 = vector.extract_strided_slice %9 {offsets = [0, 48], sizes = [8, 8], strides = [1, 1]} : vector<8x96xf32> to vector<8x8xf32>
    %54 = arith.truncf %53 : vector<8x8xf32> to vector<8x8xbf16>
    %55 = vector.extract_strided_slice %9 {offsets = [0, 80], sizes = [8, 8], strides = [1, 1]} : vector<8x96xf32> to vector<8x8xf32>
    %56 = arith.truncf %55 : vector<8x8xf32> to vector<8x8xbf16>
    %cst_17 = arith.constant dense<0.000000e+00> : vector<8x8xf32>
    %57 = tpu.matmul %52, %54, %cst_17 {dimension_numbers = #tpu.dot_dimension_numbers<[1], [1], [0], [0], [0, 0, 1, 0], [], []>} : vector<8x8xbf16>, vector<8x8xbf16>, vector<8x8xf32> -> vector<8x8xf32>
    %58 = arith.addf %57, %10 : vector<8x8xf32>
    %cst_18 = arith.constant dense<0xFF800000> : vector<8xf32>
    %59 = vector.multi_reduction <maximumf>, %58, %cst_18 [1] : vector<8x8xf32> to vector<8xf32>
    %60 = vector.shape_cast %59 : vector<8xf32> to vector<8x1xf32>
    %61 = vector.broadcast %60 : vector<8x1xf32> to vector<8x8xf32>
    %62 = arith.subf %58, %61 : vector<8x8xf32>
    %63 = math.exp %62 : vector<8x8xf32>
    %cst_19 = arith.constant dense<0.000000e+00> : vector<8xf32>
    %64 = vector.multi_reduction <add>, %63, %cst_19 [1] : vector<8x8xf32> to vector<8xf32>
    %65 = vector.shape_cast %64 : vector<8xf32> to vector<8x1xf32>
    %66 = tpu.reciprocal %65 {approx = true} : vector<8x1xf32> -> vector<8x1xf32>
    %67 = vector.broadcast %66 : vector<8x1xf32> to vector<8x8xf32>
    %68 = arith.mulf %63, %67 : vector<8x8xf32>
    %69 = arith.truncf %68 : vector<8x8xf32> to vector<8x8xbf16>
    %cst_20 = arith.constant dense<0.000000e+00> : vector<8x8xf32>
    %70 = tpu.matmul %69, %56, %cst_20 {dimension_numbers = #tpu.dot_dimension_numbers<[1], [0], [0], [1], [0, 0, 1, 1], [], []>} : vector<8x8xbf16>, vector<8x8xbf16>, vector<8x8xf32> -> vector<8x8xf32>
    %71 = vector.extract_strided_slice %9 {offsets = [0, 24], sizes = [8, 8], strides = [1, 1]} : vector<8x96xf32> to vector<8x8xf32>
    %72 = arith.truncf %71 : vector<8x8xf32> to vector<8x8xbf16>
    %73 = vector.extract_strided_slice %9 {offsets = [0, 56], sizes = [8, 8], strides = [1, 1]} : vector<8x96xf32> to vector<8x8xf32>
    %74 = arith.truncf %73 : vector<8x8xf32> to vector<8x8xbf16>
    %75 = vector.extract_strided_slice %9 {offsets = [0, 88], sizes = [8, 8], strides = [1, 1]} : vector<8x96xf32> to vector<8x8xf32>
    %76 = arith.truncf %75 : vector<8x8xf32> to vector<8x8xbf16>
    %cst_21 = arith.constant dense<0.000000e+00> : vector<8x8xf32>
    %77 = tpu.matmul %72, %74, %cst_21 {dimension_numbers = #tpu.dot_dimension_numbers<[1], [1], [0], [0], [0, 0, 1, 0], [], []>} : vector<8x8xbf16>, vector<8x8xbf16>, vector<8x8xf32> -> vector<8x8xf32>
    %78 = arith.addf %77, %10 : vector<8x8xf32>
    %cst_22 = arith.constant dense<0xFF800000> : vector<8xf32>
    %79 = vector.multi_reduction <maximumf>, %78, %cst_22 [1] : vector<8x8xf32> to vector<8xf32>
    %80 = vector.shape_cast %79 : vector<8xf32> to vector<8x1xf32>
    %81 = vector.broadcast %80 : vector<8x1xf32> to vector<8x8xf32>
    %82 = arith.subf %78, %81 : vector<8x8xf32>
    %83 = math.exp %82 : vector<8x8xf32>
    %cst_23 = arith.constant dense<0.000000e+00> : vector<8xf32>
    %84 = vector.multi_reduction <add>, %83, %cst_23 [1] : vector<8x8xf32> to vector<8xf32>
    %85 = vector.shape_cast %84 : vector<8xf32> to vector<8x1xf32>
    %86 = tpu.reciprocal %85 {approx = true} : vector<8x1xf32> -> vector<8x1xf32>
    %87 = vector.broadcast %86 : vector<8x1xf32> to vector<8x8xf32>
    %88 = arith.mulf %83, %87 : vector<8x8xf32>
    %89 = arith.truncf %88 : vector<8x8xf32> to vector<8x8xbf16>
    %cst_24 = arith.constant dense<0.000000e+00> : vector<8x8xf32>
    %90 = tpu.matmul %89, %76, %cst_24 {dimension_numbers = #tpu.dot_dimension_numbers<[1], [0], [0], [1], [0, 0, 1, 1], [], []>} : vector<8x8xbf16>, vector<8x8xbf16>, vector<8x8xf32> -> vector<8x8xf32>
    %91 = tpu.concatenate %30, %50, %70, %90 in 1 : vector<8x8xf32>, vector<8x8xf32>, vector<8x8xf32>, vector<8x8xf32> -> vector<8x32xf32>
    %92 = arith.truncf %91 : vector<8x32xf32> to vector<8x32xbf16>
    %c0_25 = arith.constant 0 : index
    %c0_26 = arith.constant 0 : index
    %93 = vector.load %arg6[%c0_25, %c0_26] : memref<32x128xbf16, #tpu.memory_space<vmem>>, vector<32x128xbf16>
    %cst_27 = arith.constant dense<0.000000e+00> : vector<8x128xf32>
    %94 = tpu.matmul %92, %93, %cst_27 {dimension_numbers = #tpu.dot_dimension_numbers<[1], [0], [0], [1], [0, 0, 1, 1], [], []>} : vector<8x32xbf16>, vector<32x128xbf16>, vector<8x128xf32> -> vector<8x128xf32>
    %c0_28 = arith.constant 0 : index
    %c0_29 = arith.constant 0 : index
    %95 = vector.load %arg7[%c0_28, %c0_29] : memref<1x128xf32, #tpu.memory_space<vmem>>, vector<1x128xf32>
    %96 = vector.broadcast %95 : vector<1x128xf32> to vector<8x128xf32>
    %97 = arith.addf %94, %96 : vector<8x128xf32>
    %98 = vector.broadcast %0 : vector<8x1xf32> to vector<8x128xf32>
    %99 = arith.mulf %97, %98 : vector<8x128xf32>
    %100 = arith.addf %99, %3 : vector<8x128xf32>
    %c0_30 = arith.constant 0 : index
    %c0_31 = arith.constant 0 : index
    %101 = vector.load %arg8[%c0_30, %c0_31] : memref<1x128xf32, #tpu.memory_space<vmem>>, vector<1x128xf32>
    %c0_32 = arith.constant 0 : index
    %c0_33 = arith.constant 0 : index
    %102 = vector.load %arg9[%c0_32, %c0_33] : memref<1x128xf32, #tpu.memory_space<vmem>>, vector<1x128xf32>
    %cst_34 = arith.constant dense<0.000000e+00> : vector<8xf32>
    %103 = vector.multi_reduction <add>, %100, %cst_34 [1] : vector<8x128xf32> to vector<8xf32>
    %104 = vector.shape_cast %103 : vector<8xf32> to vector<8x1xf32>
    %cst_35 = arith.constant 3.125000e-02 : f32
    %105 = vector.broadcast %cst_35 : f32 to vector<8x1xf32>
    %106 = arith.mulf %104, %105 : vector<8x1xf32>
    %107 = arith.mulf %100, %100 : vector<8x128xf32>
    %cst_36 = arith.constant dense<0.000000e+00> : vector<8xf32>
    %108 = vector.multi_reduction <add>, %107, %cst_36 [1] : vector<8x128xf32> to vector<8xf32>
    %109 = vector.shape_cast %108 : vector<8xf32> to vector<8x1xf32>
    %cst_37 = arith.constant 3.125000e-02 : f32
    %110 = vector.broadcast %cst_37 : f32 to vector<8x1xf32>
    %111 = arith.mulf %109, %110 : vector<8x1xf32>
    %112 = arith.mulf %106, %106 : vector<8x1xf32>
    %113 = arith.subf %111, %112 : vector<8x1xf32>
    %114 = vector.broadcast %106 : vector<8x1xf32> to vector<8x128xf32>
    %115 = arith.subf %100, %114 : vector<8x128xf32>
    %cst_38 = arith.constant 9.99999974E-6 : f32
    %116 = vector.broadcast %cst_38 : f32 to vector<8x1xf32>
    %117 = arith.addf %113, %116 : vector<8x1xf32>
    %118 = math.rsqrt %117 : vector<8x1xf32>
    %119 = vector.broadcast %118 : vector<8x1xf32> to vector<8x128xf32>
    %120 = arith.mulf %115, %119 : vector<8x128xf32>
    %121 = vector.broadcast %101 : vector<1x128xf32> to vector<8x128xf32>
    %122 = arith.mulf %120, %121 : vector<8x128xf32>
    %123 = vector.broadcast %102 : vector<1x128xf32> to vector<8x128xf32>
    %124 = arith.addf %122, %123 : vector<8x128xf32>
    %125 = arith.truncf %124 : vector<8x128xf32> to vector<8x128xbf16>
    %c0_39 = arith.constant 0 : index
    %c0_40 = arith.constant 0 : index
    %126 = vector.load %arg10[%c0_39, %c0_40] : memref<128x128xbf16, #tpu.memory_space<vmem>>, vector<128x128xbf16>
    %cst_41 = arith.constant dense<0.000000e+00> : vector<8x128xf32>
    %127 = tpu.matmul %125, %126, %cst_41 {dimension_numbers = #tpu.dot_dimension_numbers<[1], [0], [0], [1], [0, 0, 1, 1], [], []>} : vector<8x128xbf16>, vector<128x128xbf16>, vector<8x128xf32> -> vector<8x128xf32>
    %c0_42 = arith.constant 0 : index
    %c0_43 = arith.constant 0 : index
    %128 = vector.load %arg11[%c0_42, %c0_43] : memref<1x128xf32, #tpu.memory_space<vmem>>, vector<1x128xf32>
    %129 = vector.broadcast %128 : vector<1x128xf32> to vector<8x128xf32>
    %130 = arith.addf %127, %129 : vector<8x128xf32>
    %cst_44 = arith.constant 0.000000e+00 : f32
    %131 = vector.broadcast %cst_44 : f32 to vector<8x128xf32>
    %132 = arith.maximumf %130, %131 : vector<8x128xf32>
    %133 = arith.addf %124, %132 : vector<8x128xf32>
    %c0_45 = arith.constant 0 : index
    %c0_46 = arith.constant 0 : index
    %134 = vector.load %arg12[%c0_45, %c0_46] : memref<1x128xf32, #tpu.memory_space<vmem>>, vector<1x128xf32>
    %c0_47 = arith.constant 0 : index
    %c0_48 = arith.constant 0 : index
    %135 = vector.load %arg13[%c0_47, %c0_48] : memref<1x128xf32, #tpu.memory_space<vmem>>, vector<1x128xf32>
    %cst_49 = arith.constant dense<0.000000e+00> : vector<8xf32>
    %136 = vector.multi_reduction <add>, %133, %cst_49 [1] : vector<8x128xf32> to vector<8xf32>
    %137 = vector.shape_cast %136 : vector<8xf32> to vector<8x1xf32>
    %cst_50 = arith.constant 3.125000e-02 : f32
    %138 = vector.broadcast %cst_50 : f32 to vector<8x1xf32>
    %139 = arith.mulf %137, %138 : vector<8x1xf32>
    %140 = arith.mulf %133, %133 : vector<8x128xf32>
    %cst_51 = arith.constant dense<0.000000e+00> : vector<8xf32>
    %141 = vector.multi_reduction <add>, %140, %cst_51 [1] : vector<8x128xf32> to vector<8xf32>
    %142 = vector.shape_cast %141 : vector<8xf32> to vector<8x1xf32>
    %cst_52 = arith.constant 3.125000e-02 : f32
    %143 = vector.broadcast %cst_52 : f32 to vector<8x1xf32>
    %144 = arith.mulf %142, %143 : vector<8x1xf32>
    %145 = arith.mulf %139, %139 : vector<8x1xf32>
    %146 = arith.subf %144, %145 : vector<8x1xf32>
    %147 = vector.broadcast %139 : vector<8x1xf32> to vector<8x128xf32>
    %148 = arith.subf %133, %147 : vector<8x128xf32>
    %cst_53 = arith.constant 9.99999974E-6 : f32
    %149 = vector.broadcast %cst_53 : f32 to vector<8x1xf32>
    %150 = arith.addf %146, %149 : vector<8x1xf32>
    %151 = math.rsqrt %150 : vector<8x1xf32>
    %152 = vector.broadcast %151 : vector<8x1xf32> to vector<8x128xf32>
    %153 = arith.mulf %148, %152 : vector<8x128xf32>
    %154 = vector.broadcast %134 : vector<1x128xf32> to vector<8x128xf32>
    %155 = arith.mulf %153, %154 : vector<8x128xf32>
    %156 = vector.broadcast %135 : vector<1x128xf32> to vector<8x128xf32>
    %157 = arith.addf %155, %156 : vector<8x128xf32>
    %c0_54 = arith.constant 0 : index
    %c0_55 = arith.constant 0 : index
    %158 = vector.load %arg14[%c0_54, %c0_55] : memref<8x128xf32, #tpu.memory_space<vmem>>, vector<8x128xf32>
    tpu.vector_store %arg14[%c0_54, %c0_55], %157 {strides = array<i32>} : memref<8x128xf32, #tpu.memory_space<vmem>>, vector<8x128xf32>,
    return
  }
  func.func @transform_0(%arg0: i32) -> (i32, i32) {
    %c0_i32 = arith.constant 0 : i32
    %c0_i32_0 = arith.constant 0 : i32
    return %arg0, %c0_i32 : i32, i32
  }
  func.func @transform_1(%arg0: i32) -> (i32, i32) {
    %c0_i32 = arith.constant 0 : i32
    %c0_i32_0 = arith.constant 0 : i32
    return %arg0, %c0_i32 : i32, i32
  }
  func.func @transform_2(%arg0: i32) -> (i32, i32) {
    %c0_i32 = arith.constant 0 : i32
    %c0_i32_0 = arith.constant 0 : i32
    return %arg0, %c0_i32 : i32, i32
  }
  func.func @transform_3(%arg0: i32) -> (i32, i32) {
    %c0_i32 = arith.constant 0 : i32
    %c0_i32_0 = arith.constant 0 : i32
    %c0_i32_1 = arith.constant 0 : i32
    return %c0_i32, %c0_i32_0 : i32, i32
  }
  func.func @transform_4(%arg0: i32) -> (i32, i32) {
    %c0_i32 = arith.constant 0 : i32
    %c0_i32_0 = arith.constant 0 : i32
    %c0_i32_1 = arith.constant 0 : i32
    return %c0_i32, %c0_i32_0 : i32, i32
  }
  func.func @transform_5(%arg0: i32) -> (i32, i32) {
    %c0_i32 = arith.constant 0 : i32
    %c0_i32_0 = arith.constant 0 : i32
    %c0_i32_1 = arith.constant 0 : i32
    return %c0_i32, %c0_i32_0 : i32, i32
  }
  func.func @transform_6(%arg0: i32) -> (i32, i32) {
    %c0_i32 = arith.constant 0 : i32
    %c0_i32_0 = arith.constant 0 : i32
    %c0_i32_1 = arith.constant 0 : i32
    return %c0_i32, %c0_i32_0 : i32, i32
  }
  func.func @transform_7(%arg0: i32) -> (i32, i32) {
    %c0_i32 = arith.constant 0 : i32
    %c0_i32_0 = arith.constant 0 : i32
    %c0_i32_1 = arith.constant 0 : i32
    return %c0_i32, %c0_i32_0 : i32, i32
  }
  func.func @transform_8(%arg0: i32) -> (i32, i32) {
    %c0_i32 = arith.constant 0 : i32
    %c0_i32_0 = arith.constant 0 : i32
    %c0_i32_1 = arith.constant 0 : i32
    return %c0_i32, %c0_i32_0 : i32, i32
  }
  func.func @transform_9(%arg0: i32) -> (i32, i32) {
    %c0_i32 = arith.constant 0 : i32
    %c0_i32_0 = arith.constant 0 : i32
    %c0_i32_1 = arith.constant 0 : i32
    return %c0_i32, %c0_i32_0 : i32, i32
  }
  func.func @transform_10(%arg0: i32) -> (i32, i32) {
    %c0_i32 = arith.constant 0 : i32
    %c0_i32_0 = arith.constant 0 : i32
    %c0_i32_1 = arith.constant 0 : i32
    return %c0_i32, %c0_i32_0 : i32, i32
  }
  func.func @transform_11(%arg0: i32) -> (i32, i32) {
    %c0_i32 = arith.constant 0 : i32
    %c0_i32_0 = arith.constant 0 : i32
    %c0_i32_1 = arith.constant 0 : i32
    return %c0_i32, %c0_i32_0 : i32, i32
  }
  func.func @transform_12(%arg0: i32) -> (i32, i32) {
    %c0_i32 = arith.constant 0 : i32
    %c0_i32_0 = arith.constant 0 : i32
    %c0_i32_1 = arith.constant 0 : i32
    return %c0_i32, %c0_i32_0 : i32, i32
  }
  func.func @transform_13(%arg0: i32) -> (i32, i32) {
    %c0_i32 = arith.constant 0 : i32
    %c0_i32_0 = arith.constant 0 : i32
    return %arg0, %c0_i32 : i32, i32
  }
}

</mosaic_0001>

<bundles_post_ra>
// kernel: tpu_custom_call.1
= control target key start
LH: loop header
LB: loop body
LE: loop exit
PB: predicated region body
PF: predicated region fallthrough
CT: control target
= control target key end

     0   :  { %s2108_s0 = inlined_call_operand.vmem [shape: f32[16,128], index: 0, kind: input, shape index: {}]   ;;  %s2109_s1 = inlined_call_operand.vmem [shape: f32[16,1], index: 1, kind: input, shape index: {}]   ;;  %s2110_s2 = inlined_call_operand.vmem [shape: f32[16,8], index: 2, kind: input, shape index: {}]   ;;  %s2111_s3 = inlined_call_operand.vmem [shape: bf16[128,96], index: 3, kind: input, shape index: {}]   ;;  %s2112_s4 = inlined_call_operand.vmem [shape: f32[1,96], index: 4, kind: input, shape index: {}]   ;;  %s2113_s5 = inlined_call_operand.vmem [shape: bf16[32,128], index: 5, kind: input, shape index: {}]   ;;  %s2114_s6 = inlined_call_operand.vmem [shape: f32[1,128], index: 6, kind: input, shape index: {}]   ;;  %s2115_s7 = inlined_call_operand.vmem [shape: f32[1,128], index: 7, kind: input, shape index: {}]   ;;  %s2116_s8 = inlined_call_operand.vmem [shape: f32[1,128], index: 8, kind: input, shape index: {}]   ;;  %s2117_s9 = inlined_call_operand.vmem [shape: bf16[128,128], index: 9, kind: input, shape index: {}]   ;;  %s2118_s10 = inlined_call_operand.vmem [shape: f32[1,128], index: 10, kind: input, shape index: {}]   ;;  %s2119_s11 = inlined_call_operand.vmem [shape: f32[1,128], index: 11, kind: input, shape index: {}]   ;;  %s2120_s12 = inlined_call_operand.vmem [shape: f32[1,128], index: 12, kind: input, shape index: {}]   ;;  %s2121_s13 = inlined_call_operand.hbm [shape: f32[16,128], index: 13, kind: output, shape index: {}]  }
   0x1   :  { %2122 = sst [smem:[#allocation6_spill]] %s2108_s0 }
   0x2   :  { %2123 = sst [smem:[#allocation7_spill]] %s2109_s1 }
   0x3   :  { %2124 = sst [smem:[#allocation8_spill]] %s2110_s2 }
   0x4   :  { %18 = vsyncpa [#allocation3], 0 }
   0x5   :  { %20 = vsyncpa [#allocation3 + $0x1], 0  ;;  %s1817_s25 = smov 0   ;;  %s1819_s26 = smov 0  }
   0x6   :  { %s1821_s27 = smov 0   ;;  %s1823_s28 = smov 0  }
   0x7 LB: > { %s1838_s29 = sadd.s32 4294967295, %s1727_s28   ;;  %s1391_s30 = sadd.s32 4294967294, %s1727_s28   ;;  %s1727_s28 = sphi %s1823_s28, %s2135_s28   ;;  %s1723_s27 = sphi %s1821_s27, %s2134_s27   ;;  %s1719_s26 = sphi %s1819_s26, %s2133_s26   ;;  %s1715_s25 = sphi %s1817_s25, %s2132_s25  }
   0x8   : > { %s1842_s14 = sadd.s32 1, %s1727_s28   ;;  %s321_s15 = sadd.s32 1, %s1723_s27 }
   0x9   : > { %s318_s16 = ssub.s32 %s1727_s28, %s1842_s14  ;;  %p331_p0 = scmp.ne.s32.totalorder %s1723_s27, %s1719_s26 }
   0xa   : > { %p319_p1 = scmp.eq.s32.totalorder %s318_s16, 0  ;;  %p332_p2 = scmp.eq.s32.totalorder %s1838_s29, 1 }
   0xb   : > { %p337_p3 = scmp.ne.s32.totalorder %s1719_s26, %s1715_s25  ;;  %p338_p4 = scmp.eq.s32.totalorder %s1391_s30, 1 }
   0xc   : > { %s1853_s17 = scalar_select %p319_p1, %s1723_s27, %s321_s15  }
   0xd   : > { %p1855_p5 = por %p332_p2, %p331_p0  ;;  %p1859_p6 = por %p338_p4, %p337_p3 }
   0xe   : > { %2125 = sst [smem:[#allocation5_spill]] %s1853_s17  ;;  %p1394_p7 = scmp.ge.s32.totalorder %s1727_s28, 1 }
   0xf   : > { %p407_p8 = scmp.lt.s32.totalorder %s1727_s28, 3 }
  0x11   : > { %p408_p9 = pnand %p1394_p7, %p407_p8 }
  0x12   : > { %p458_p10 = scmp.lt.s32.totalorder (!%p408_p9), %s1838_s29, 1  ;;  %v1627_v0 = vld [vmem:[%s2111_s3] sm:$0xff] (!%p408_p9)   ;;  %v1729_v1 = vmov (!%p408_p9), 0   ;;  %v1730_v2 = vmov (!%p408_p9), 0.0   ;;  %v1628_v3 = vld [vmem:[%s2111_s3 + $0x8] sm:$0xff] (!%p408_p9)   ;;  %s2128_s1 = sld [smem:[#allocation7_spill]] (!%p408_p9) }
  0x13   : > { %411 = sbr.rel (%p408_p9) target bundleno = 2704 (0xa90), region = 72  ;;  %1626 = vset.pattern.permute.xlu0 (!%p408_p9), %v1729_v1  ;;  %1474 = vmatprep.subr.bf16.mxu0 (!%p408_p9), %v1730_v2  ;;  %v1629_v5 = vld [vmem:[%s2111_s3 + $0x10] sm:$0xff] (!%p408_p9)   ;;  %v1630_v6 = vld [vmem:[%s2111_s3 + $0x18] sm:$0xff] (!%p408_p9)   ;;  %vm1731_vm0 = vmmov (!%p408_p9), 0   ;;  %v1631_v7 = vld [vmem:[%s2111_s3 + $0x20] sm:$0xff] (!%p408_p9)   ;;  %s2129_s0 = sld [smem:[#allocation6_spill]] (!%p408_p9) }
  0x14   : > { %1475 = vmatpush3.bf16.msra.mxu0 (!%p408_p9), %v1627_v0  ;;  %1500 = vmatprep.subr.bf16.mxu1 (!%p408_p9), %v1730_v2  ;;  %v1632_v8 = vld [vmem:[%s2111_s3 + $0x28] sm:$0xff] (!%p408_p9)   ;;  %v1633_v9 = vld [vmem:[%s2111_s3 + $0x30] sm:$0xff] (!%p408_p9)   ;;  %v1634_v10 = vld [vmem:[%s2111_s3 + $0x38] sm:$0xff] (!%p408_p9)   ;;  %s1732_s21 = smov (!%p408_p9), 96   ;;  %s1733_s23 = smov (!%p408_p9), 64   ;;  %vm596_vm1 = vcmask (!%p408_p9), 64512  }
  0x15   : > { %1476 = vmatprep.subr.bf16.mxu0 (!%p408_p9), %v1730_v2  ;;  %1490 = vmatprep.mubr.msk.bf16.mxu0 (!%p408_p9), %vm1731_vm0, %v1730_v2  ;;  %v1399_v15 = vld [vmem:[%s2112_s4] ss:$0 sm:$0xff] (!%p408_p9)  ;;  %s1734_s24 = smov (!%p408_p9), 120   ;;  %s1735_s17 = smov (!%p408_p9), 80   ;;  %vm660_vm2 = vcmask (!%p408_p9), 1043456   ;;  %vm1047_vm3 = vcmask (!%p408_p9), 130048  }
  0x16   : > { %1502 = vmatprep.mubr.msk.bf16.mxu1 (!%p408_p9), %vm1731_vm0, %v1730_v2  ;;  %s2130_s2 = sld [smem:[#allocation8_spill]] (!%p408_p9)  ;;  %vm1049_vm4 = vcmask (!%p408_p9), 195584   ;;  %vm1075_vm5 = vcmask (!%p408_p9), 261120   ;;  %s1434_s16 = sshll.u32 (!%p408_p9), %s1838_s29, 7 }
  0x18   : > { %1477 = vmatpush3.bf16.msra.mxu0 (!%p408_p9), %v1628_v3 }
  0x19   : > { %1478 = vmatprep.subr.bf16.mxu0 (!%p408_p9), %v1730_v2 }
  0x1a   : > { %s459_s22 = scalar_select %p458_p10, %s1838_s29, 1 }
  0x1b   : > { %s1746_s29 = smov [#allocation2]  }
  0x1c   : > { %s1876_s30 = sshll.u32 %s459_s22, 3  ;;  %1479 = vmatpush3.bf16.msra.mxu0 %v1629_v5  ;;  %s1736_s22 = smov 112  }
  0x1d   : > { %s465_s20 = scalar_lea.vmem %s2128_s1, %s1876_s30  ;;  %1480 = vmatprep.subr.bf16.mxu0 %v1730_v2  ;;  %s461_s15 = scalar_lea.vmem %s2129_s0, %s1876_s30 }
  0x1e   : > { %v471_v4 = vld [vmem:[%s465_s20] sm:$0xff]  ;;  %s1743_s20 = smov 8  }
  0x1f   : > { %475 = vperm.xlu0 %1626, %v471_v4   ;;  %v472_v11 = vld [vmem:[%s461_s15] sm:$0xff]  ;;  %s1737_s15 = smov 72  }
  0x20   : > { %1481 = vmatpush3.bf16.msra.mxu0 %v1630_v6 }
  0x21   : > { %1482 = vmatprep.subr.bf16.mxu0 %v1730_v2 }
  0x24   : > { %1483 = vmatpush3.bf16.msra.mxu0 %v1631_v7 }
  0x25   : > { %1484 = vmatprep.subr.bf16.mxu0 %v1730_v2 }
  0x28   : > { %1485 = vmatpush3.bf16.msra.mxu0 %v1632_v8 }
  0x29   : > { %1486 = vmatprep.subr.bf16.mxu0 %v1730_v2 }
  0x2c   : > { %1487 = vmatpush3.bf16.msra.mxu0 %v1633_v9 }
  0x2d   : > { %1488 = vmatprep.subr.bf16.mxu0 %v1730_v2 }
  0x30   : > { %1489 = vmatpush3.bf16.msra.mxu0 %v1634_v10 }
  0x31   : > { %1494 = vmatprep.subr.bf16.mxu0 %v1730_v2 }
  0x9e   : > { %v1915_v12 = vpop.permute.xlu0 %475 }
  0x9f   : > { %v1918_v13 = vmul.f32 %v1915_v12, %v472_v11 }
  0xa1   : > { %v479_v14 = vpack.c.bf16 %v1918_v13, %v1918_v13 }
  0xa3   : > { %1491 = vmatmul.mubr.bf16.vlgmr.msra.gmra.mrb[0].mxu0 %v479_v14 }
  0xa4   : > { %1496 = vmatprep.mubr.msk.bf16.mxu0 %vm1731_vm0, %v1730_v2 }
 0x176   : > { %v585_v16 = vpop.f32.mrb[0].mxu0 }
 0x177   : > { %v586_v17 = vadd.f32 %v1399_v15, %v585_v16  ;;  %v1492_v18 = vpop.f32.mrb[1].mxu0 }
 0x178   : > { %v588_v19 = vpop.f32.mrb[2].mxu0 }
 0x179   : > { %v1927_v20 = vpack.c.bf16 %v586_v17, %v586_v17  ;;  %v1493_v21 = vpop.f32.mrb[3].mxu0 }
 0x17b   : > { %594 = vrot.lane.b32.xlu0 %v1927_v20, %s1732_s21  ;;  %s469_s21 = scalar_lea.vmem %s2130_s2, %s1876_s30  ;;  %s1738_s30 = smov 88  }
 0x17c   : > { %v1954_v32 = vld [vmem:[%s469_s21] sm:$0xff]  ;;  %s2066_s2 = scalar_lea.hbm %s2121_s13, %s1434_s16 }
 0x17f   : > { %655 = vrot.lane.b32.xlu0 %v1927_v20, %s1733_s23  ;;  %s1739_s23 = smov 104  }
 0x183   : > { %704 = vrot.lane.b32.xlu0 %v1927_v20, %s1734_s24  ;;  %s1740_s24 = smov 56  }
 0x187   : > { %816 = vrot.lane.b32.xlu0 %v1927_v20, %s1735_s17  ;;  %s1741_s17 = smov 40  }
 0x18b   : > { %814 = vrot.lane.b32.xlu0 %v1927_v20, %s1736_s22  ;;  %s1742_s22 = smov 48  }
 0x18f   : > { %926 = vrot.lane.b32.xlu0 %v1927_v20, %s1737_s15 }
 0x1ed   : > { %v595_v22 = vpop.permute.xlu0 %594 }
 0x1ee   : > { %v601_v23 = vsel %vm596_vm1, %v595_v22, 0 }
 0x1ef   : > { %1495 = vmatpush3.bf16.xpose.msra.mxu0 %v601_v23 }
 0x1f0   : > { %1518 = vmatprep.subr.bf16.mxu0 %v1730_v2 }
 0x1f1   : > { %v656_v24 = vpop.permute.xlu0 %655 }
 0x1f2   : > { %v662_v25 = vsel %vm660_vm2, %v656_v24, 0 }
 0x1f3   : > { %1501 = vmatpush3.bf16.msra.mxu1 %v662_v25 }
 0x1f4   : > { %1506 = vmatprep.subr.bf16.mxu1 %v1730_v2 }
 0x1f5   : > { %v705_v26 = vpop.permute.xlu0 %704 }
 0x1f6   : > { %1497 = vmatmul.mubr.msk.bf16.vlgmr.msra.gmra.mrb[4].mxu0 %vm596_vm1, %v1927_v20 }
 0x1f7   : > { %1520 = vmatprep.mubr.msk.bf16.mxu0 %vm1731_vm0, %v1730_v2 }
 0x1f9   : > { %v817_v27 = vpop.permute.xlu0 %816 }
 0x1fa   : > { %v822_v28 = vsel %vm596_vm1, %v817_v27, 0 }
 0x1fb   : > { %1519 = vmatpush3.bf16.xpose.msra.mxu0 %v822_v28 }
 0x1fc   : > { %1530 = vmatprep.subr.bf16.mxu0 %v1730_v2 }
 0x1fd   : > { %v815_v29 = vpop.permute.xlu0 %814 }
 0x201   : > { %v927_v30 = vpop.permute.xlu0 %926 }
 0x202   : > { %v932_v31 = vsel %vm596_vm1, %v927_v30, 0  ;;  %1521 = vmatmul.mubr.msk.bf16.vlgmr.msra.gmra.mrb[8].mxu0 %vm596_vm1, %v815_v29 }
 0x203   : > { %1531 = vmatpush3.bf16.xpose.msra.mxu0 %v932_v31  ;;  %1532 = vmatprep.mubr.msk.bf16.mxu0 %vm1731_vm0, %v1730_v2 }
 0x204   : > { %1542 = vmatprep.subr.bf16.mxu0 %v1730_v2 }
 0x2c9   : > { %v637_v33 = vpop.f32.mrb[4].mxu0 }
 0x2ca   : > { %v638_v34 = vadd.f32 %v637_v33, %v1954_v32  ;;  %v1498_v35 = vpop.f32.mrb[5].mxu0 }
 0x2cb   : > { %v640_v36 = vpop.f32.mrb[6].mxu0 }
 0x2cc   : > { %v1499_v37 = vpop.f32.mrb[7].mxu0  ;;  %v643_v38 = vsel %vm596_vm1, %v638_v34, -inf }
 0x2cd   : > { %644 = vmax.xlane.f32.xlu1 %v643_v38 }
 0x2d5   : > { %v858_v39 = vpop.f32.mrb[8].mxu0 }
 0x2d6   : > { %v1522_v40 = vpop.f32.mrb[9].mxu0  ;;  %v859_v48 = vadd.f32 %v858_v39, %v1954_v32 }
 0x2d7   : > { %v861_v41 = vpop.f32.mrb[10].mxu0 }
 0x2d8   : > { %v1523_v42 = vpop.f32.mrb[11].mxu0  ;;  %v864_v49 = vsel %vm596_vm1, %v859_v48, -inf }
 0x35a   : > { %v645_v43 = vpop.xlane.xlu1 %644 }
 0x35b   : > { %v646_v44 = vsub.f32 %v638_v34, %v645_v43 }
 0x35d   : > { %v647_v45 = vmul.f32 1.442695, %v646_v44 }
 0x35f   : > { %1645 = vpow2.f32 %v647_v45  ;;  %v1635_v45 = vld [vmem:[%s2113_s5] sm:$0xff]  }
 0x369   : > { %v1646_v46 = vpop.eup %1645 }
 0x36a   : > { %v649_v47 = vsel %vm596_vm1, %v1646_v46, 0.0 }
 0x36b   : > { %650 = vadd.xlane.f32.xlu1 %v649_v47 }
 0x37c   : > { %706 = vrot.lane.b32.xlu1 %v1927_v20, %s1738_s30  ;;  %s455_s30 = sand.u32 1, %s1719_s26  }
 0x380   : > { %924 = vrot.lane.b32.xlu1 %v1927_v20, %s1739_s23  ;;  %s1744_s23 = smov 16  }
 0x3a4   : > { %865 = vmax.xlane.f32.xlu1 %v864_v49 }
 0x3f8   : > { %v651_v50 = vpop.xlane.xlu1 %650 }
 0x3f9   : > { %1647 = vrcp.f32 %v651_v50  ;;  %v1636_v50 = vld [vmem:[%s2113_s5 + $0x8] sm:$0xff]  }
 0x3fc   : > { %v707_v51 = vpop.permute.xlu1 %706 }
 0x3fd   : > { %v712_v56 = vsel %vm596_vm1, %v707_v51, 0 }
 0x400   : > { %v925_v52 = vpop.permute.xlu1 %924 }
 0x401   : > { %1533 = vmatmul.mubr.msk.bf16.vlgmr.msra.gmra.mrb[12].mxu0 %vm596_vm1, %v925_v52 }
 0x402   : > { %1546 = vmatprep.mubr.msk.bf16.mxu0 %vm1731_vm0, %v1730_v2  ;;  %1543 = vmatpush3.bf16.msra.mxu0 %v1635_v45 }
 0x403   : > { %v1648_v53 = vpop.eup %1647  ;;  %1544 = vmatprep.subr.bf16.mxu0 %v1730_v2 }
 0x404   : > { %v653_v54 = vmul.f32 %v1648_v53, %v1646_v46 }
 0x406   : > { %v654_v55 = vpack.c.bf16 %v653_v54, %v653_v54  ;;  %1545 = vmatpush3.bf16.msra.mxu0 %v1636_v50 }
 0x408   : > { %1503 = vmatmul.mubr.msk.bf16.vlgmr.msra.gmra.mrb[0].mxu1 %vm596_vm1, %v654_v55 }
 0x409   : > { %1507 = vmatpush3.bf16.xpose.msra.mxu1 %v712_v56  ;;  %1508 = vmatprep.mubr.msk.bf16.mxu1 %vm1731_vm0, %v1730_v2 }
 0x40a   : > { %1512 = vmatprep.subr.bf16.mxu1 %v1730_v2 }
 0x410   : > { %1509 = vmatmul.mubr.msk.bf16.vlgmr.msra.gmra.mrb[4].mxu1 %vm596_vm1, %v705_v26 }
 0x411   : > { %1514 = vmatprep.mubr.msk.bf16.mxu1 %vm1731_vm0, %v1730_v2 }
 0x431   : > { %v866_v57 = vpop.xlane.xlu1 %865 }
 0x432   : > { %v867_v58 = vsub.f32 %v859_v48, %v866_v57 }
 0x434   : > { %v868_v59 = vmul.f32 1.442695, %v867_v58 }
 0x436   : > { %1649 = vpow2.f32 %v868_v59 }
 0x440   : > { %v1650_v60 = vpop.eup %1649 }
 0x441   : > { %v870_v61 = vsel %vm596_vm1, %v1650_v60, 0.0 }
 0x442   : > { %871 = vadd.xlane.f32.xlu1 %v870_v61 }
 0x453   : > { %766 = vrot.lane.b32.xlu1 %v1927_v20, %s1740_s24  ;;  %s1745_s24 = smov 24  }
 0x457   : > { %986 = vrot.lane.b32.xlu1 %v1927_v20, %s1741_s17 }
 0x4cf   : > { %v872_v62 = vpop.xlane.xlu1 %871 }
 0x4d3   : > { %v767_v63 = vpop.permute.xlu1 %766 }
 0x4d4   : > { %v772_v0 = vsel %vm660_vm2, %v767_v63, 0  ;;  %v968_v1 = vpop.f32.mrb[12].mxu0 }
 0x4d5   : > { %1513 = vmatpush3.bf16.msra.mxu1 %v772_v0  ;;  %v1534_v3 = vpop.f32.mrb[13].mxu0  ;;  %v969_v16 = vadd.f32 %v968_v1, %v1954_v32 }
 0x4d6   : > { %v971_v4 = vpop.f32.mrb[14].mxu0  ;;  %1524 = vmatprep.subr.bf16.mxu1 %v1730_v2  ;;  %v1637_v3 = vld [vmem:[%s2117_s9] sm:$0xff]  }
 0x4d7   : > { %v1535_v5 = vpop.f32.mrb[15].mxu0  ;;  %v974_v19 = vsel %vm596_vm1, %v969_v16, -inf  ;;  %v1416_v4 = vld [vmem:[%s2114_s6] ss:$0 sm:$0xff] }
 0x4db   : > { %v1979_v6 = vpop.f32.mrb[0].mxu1 }
 0x4dc   : > { %v1504_v7 = vpop.f32.mrb[1].mxu1 }
 0x4dd   : > { %v701_v8 = vpop.f32.mrb[2].mxu1 }
 0x4de   : > { %v1505_v9 = vpop.f32.mrb[3].mxu1 }
 0x4e3   : > { %v748_v10 = vpop.f32.mrb[4].mxu1 }
 0x4e4   : > { %v749_v11 = vadd.f32 %v748_v10, %v1954_v32  ;;  %v1510_v14 = vpop.f32.mrb[5].mxu1 }
 0x4e5   : > { %v751_v15 = vpop.f32.mrb[6].mxu1 }
 0x4e6   : > { %v1511_v17 = vpop.f32.mrb[7].mxu1  ;;  %v754_v18 = vsel %vm596_vm1, %v749_v11, -inf  ;;  %v1638_v15 = vld [vmem:[%s2117_s9 + $0x8] sm:$0xff]  }
 0x4e7   : > { %755 = vmax.xlane.f32.xlu0 %v754_v18  ;;  %v1642_v17 = vld [vmem:[%s2117_s9 + $0x28] sm:$0xff]   ;;  %v1643_v18 = vld [vmem:[%s2117_s9 + $0x30] sm:$0xff]  }
 0x4eb   : > { %975 = vmax.xlane.f32.xlu0 %v974_v19  ;;  %v1644_v19 = vld [vmem:[%s2117_s9 + $0x38] sm:$0xff]  }
 0x574   : > { %v756_v21 = vpop.xlane.xlu0 %755 }
 0x575   : > { %v757_v22 = vsub.f32 %v749_v11, %v756_v21 }
 0x577   : > { %v758_v23 = vmul.f32 1.442695, %v757_v22 }
 0x578   : > { %v976_v24 = vpop.xlane.xlu0 %975 }
 0x579   : > { %1651 = vpow2.f32 %v758_v23  ;;  %v977_v25 = vsub.f32 %v969_v16, %v976_v24  ;;  %v1639_v16 = vld [vmem:[%s2117_s9 + $0x10] sm:$0xff]  }
 0x57b   : > { %v978_v26 = vmul.f32 1.442695, %v977_v25 }
 0x57d   : > { %1653 = vpow2.f32 %v978_v26 }
 0x583   : > { %v1652_v27 = vpop.eup %1651 }
 0x584   : > { %v760_v28 = vsel %vm596_vm1, %v1652_v27, 0.0 }
 0x585   : > { %761 = vadd.xlane.f32.xlu0 %v760_v28 }
 0x587   : > { %v1654_v29 = vpop.eup %1653 }
 0x588   : > { %v980_v30 = vsel %vm596_vm1, %v1654_v29, 0.0 }
 0x589   : > { %981 = vadd.xlane.f32.xlu0 %v980_v30  ;;  %v1420_v30 = vld [vmem:[%s2115_s7] ss:$0 sm:$0xff] }
 0x59f   : > { %876 = vrot.lane.b32.xlu0 %v1927_v20, %s1742_s22  ;;  %v987_v20 = vpop.permute.xlu1 %986 }
 0x5a0   : > { %v992_v42 = vsel %vm660_vm2, %v987_v20, 0 }
 0x612   : > { %v762_v31 = vpop.xlane.xlu0 %761 }
 0x613   : > { %1655 = vrcp.f32 %v762_v31 }
 0x614   : > { %1657 = vrcp.f32 %v872_v62 }
 0x616   : > { %v982_v32 = vpop.xlane.xlu0 %981 }
 0x617   : > { %1659 = vrcp.f32 %v982_v32 }
 0x61a   : > { %v877_v35 = vpop.permute.xlu0 %876 }
 0x61b   : > { %v882_v38 = vsel %vm660_vm2, %v877_v35, 0  ;;  %v1422_v35 = vld [vmem:[%s2118_s10] ss:$0 sm:$0xff] }
 0x61d   : > { %v1656_v33 = vpop.eup %1655 }
 0x61e   : > { %v764_v34 = vmul.f32 %v1656_v33, %v1652_v27  ;;  %v1658_v37 = vpop.eup %1657 }
 0x61f   : > { %v874_v39 = vmul.f32 %v1658_v37, %v1650_v60 }
 0x620   : > { %v765_v36 = vpack.c.bf16 %v764_v34, %v764_v34 }
 0x621   : > { %v875_v40 = vpack.c.bf16 %v874_v39, %v874_v39  ;;  %v1660_v41 = vpop.eup %1659 }
 0x622   : > { %1515 = vmatmul.mubr.msk.bf16.vlgmr.msra.gmra.mrb[8].mxu1 %vm596_vm1, %v765_v36  ;;  %v984_v43 = vmul.f32 %v1660_v41, %v1654_v29 }
 0x623   : > { %1525 = vmatpush3.bf16.msra.mxu1 %v882_v38  ;;  %1526 = vmatprep.mubr.msk.bf16.mxu1 %vm1731_vm0, %v1730_v2 }
 0x624   : > { %1536 = vmatprep.subr.bf16.mxu1 %v1730_v2  ;;  %v985_v44 = vpack.c.bf16 %v984_v43, %v984_v43 }
 0x62a   : > { %1527 = vmatmul.mubr.msk.bf16.vlgmr.msra.gmra.mrb[12].mxu1 %vm596_vm1, %v875_v40 }
 0x62b   : > { %1537 = vmatpush3.bf16.msra.mxu1 %v992_v42  ;;  %1538 = vmatprep.mubr.msk.bf16.mxu1 %vm1731_vm0, %v1730_v2 }
 0x62c   : > { %1550 = vmatprep.subr.bf16.mxu1 %v1730_v2 }
 0x632   : > { %1539 = vmatmul.mubr.msk.bf16.vlgmr.msra.gmra.mrb[16].mxu1 %vm596_vm1, %v985_v44 }
 0x633   : > { %1566 = vmatprep.mubr.msk.bf16.mxu1 %vm1731_vm0, %v1730_v2  ;;  %1551 = vmatpush3.bf16.msra.mxu1 %v1637_v3 }
 0x634   : > { %1552 = vmatprep.subr.bf16.mxu1 %v1730_v2 }
 0x637   : > { %1553 = vmatpush3.bf16.msra.mxu1 %v1638_v15 }
 0x638   : > { %1554 = vmatprep.subr.bf16.mxu1 %v1730_v2 }
 0x63b   : > { %1555 = vmatpush3.bf16.msra.mxu1 %v1639_v16 }
 0x63c   : > { %1556 = vmatprep.subr.bf16.mxu1 %v1730_v2 }
 0x6f5   : > { %v808_v46 = vpop.f32.mrb[8].mxu1 }
 0x6f6   : > { %1035 = vrot.lane.b32.xlu1 %v808_v46, %s1743_s20  ;;  %v1516_v47 = vpop.f32.mrb[9].mxu1 }
 0x6f7   : > { %v811_v48 = vpop.f32.mrb[10].mxu1 }
 0x6f8   : > { %v1517_v49 = vpop.f32.mrb[11].mxu1 }
 0x6fd   : > { %v918_v51 = vpop.f32.mrb[12].mxu1 }
 0x6fe   : > { %1039 = vrot.lane.b32.xlu0 %v918_v51, %s1744_s23  ;;  %v1528_v52 = vpop.f32.mrb[13].mxu1  ;;  %s1395_s23 = sshll.u32 %s455_s30, 3 }
 0x6ff   : > { %v921_v53 = vpop.f32.mrb[14].mxu1  ;;  %v1431_v52 = vld [vmem:[%s2119_s11] ss:$0 sm:$0xff]  ;;  %s457_s20 = scalar_lea.vmem [#allocation2], %s1395_s23  ;;  %s1669_s23 = sshll.u32 %s1746_s29, 4  ;;  %s1670_s23 = int_to_ptr.vmem [resolvable:$false] %s1669_s23 }
 0x700   : > { %v1529_v54 = vpop.f32.mrb[15].mxu1  ;;  %s1308_s21 = sshll.u32 %s457_s20, 4  ;;  %s1671_s22 = scalar_lea.vmem %s1670_s23, 256  ;;  %s2068_s21 = int_to_ptr.vmem [resolvable:$true] %s1308_s21 }
 0x701   : > { %v1432_v54 = vld [vmem:[%s2120_s12] ss:$0 sm:$0xff]  ;;  %s1665_s17 = scalar_lea.vmem %s2068_s21, 128  ;;  %p1672_p0 = scmp.lt.s32.totalorder %s2068_s21, %s1670_s23 }
 0x702   : > { %p1666_p11 = scmp.ne.s32.totalorder %s2068_s21, %s1665_s17  ;;  %p1673_p1 = scmp.lt.s32.totalorder %s1671_s22, %s1665_s17 }
 0x704   : > { %p1667_p12 = pnand %p1666_p11, %p1855_p5  ;;  %p1674_p2 = por %p1673_p1, %p1672_p0 }
 0x705   : > { %v1028_v55 = vpop.f32.mrb[16].mxu1 }
 0x706   : > { %1043 = vrot.lane.b32.xlu1 %v1028_v55, %s1745_s24  ;;  %v1540_v56 = vpop.f32.mrb[17].mxu1  ;;  %s1295_s24 = scalar_lea.sflag [#allocation3], %s455_s30  ;;  %p1668_p13 = pneg %p1667_p12 }
 0x707   : > { %v1031_v57 = vpop.f32.mrb[18].mxu1 }
 0x708   : > { %v1541_v58 = vpop.f32.mrb[19].mxu1  ;;  %p1675_p3 = pnand %p1674_p2, %p1668_p13 }
 0x768   : > { %v1036_v59 = vpop.permute.xlu1 %1035 }
 0x769   : > { %v1046_v61 = vsel %vm596_vm1, %v1979_v6, %v1036_v59 }
 0x770   : > { %v1040_v60 = vpop.permute.xlu0 %1039 }
 0x771   : > { %v1048_v62 = vsel %vm1047_vm3, %v1046_v61, %v1040_v60 }
 0x778   : > { %v1044_v63 = vpop.permute.xlu1 %1043 }
 0x779   : > { %v1050_v0 = vsel %vm1049_vm4, %v1048_v62, %v1044_v63 }
 0x77a   : > { %v1051_v1 = vpack.c.bf16 %v1050_v0, %v1050_v0 }
 0x77c   : > { %1547 = vmatmul.mubr.msk.bf16.vlgmr.msra.gmra.mrb[16].mxu0 %vm1075_vm5, %v1051_v1 }
 0x84f   : > { %v1113_v5 = vpop.f32.mrb[16].mxu0 }
 0x850   : > { %v1114_v7 = vadd.f32 %v1416_v4, %v1113_v5  ;;  %v1548_v6 = vpop.f32.mrb[17].mxu0 }
 0x851   : > { %v1116_v8 = vpop.f32.mrb[18].mxu0 }
 0x852   : > { %v1119_v9 = vmul.f32 %v1114_v7, %v1915_v12  ;;  %v1549_v10 = vpop.f32.mrb[19].mxu0  ;;  %v1640_v12 = vld [vmem:[%s2117_s9 + $0x18] sm:$0xff]  }
 0x853   : > { %1557 = vmatpush3.bf16.msra.mxu1 %v1640_v12 }
 0x854   : > { %v1120_v11 = vadd.f32 %v1119_v9, %v1918_v13  ;;  %v1641_v13 = vld [vmem:[%s2117_s9 + $0x20] sm:$0xff]   ;;  %1558 = vmatprep.subr.bf16.mxu1 %v1730_v2 }
 0x856   : > { %1123 = vadd.xlane.f32.xlu0 %v1120_v11  ;;  %v1126_v14 = vmul.f32 %v1120_v11, %v1120_v11 }
 0x857   : > { %1559 = vmatpush3.bf16.msra.mxu1 %v1641_v13 }
 0x858   : > { %1127 = vadd.xlane.f32.xlu1 %v1126_v14  ;;  %1560 = vmatprep.subr.bf16.mxu1 %v1730_v2 }
 0x85b   : > { %1561 = vmatpush3.bf16.msra.mxu1 %v1642_v17 }
 0x85c   : > { %1562 = vmatprep.subr.bf16.mxu1 %v1730_v2 }
 0x85f   : > { %1563 = vmatpush3.bf16.msra.mxu1 %v1643_v18 }
 0x860   : > { %1564 = vmatprep.subr.bf16.mxu1 %v1730_v2  ;;  %v1421_v2 = vld [vmem:[%s2116_s8] ss:$0 sm:$0xff] }
 0x863   : > { %1565 = vmatpush3.bf16.msra.mxu1 %v1644_v19 }
 0x8e3   : > { %v1124_v21 = vpop.xlane.xlu0 %1123 }
 0x8e4   : > { %v1125_v22 = vmul.f32 0.03125, %v1124_v21 }
 0x8e5   : > { %v1128_v23 = vpop.xlane.xlu1 %1127 }
 0x8e6   : > { %v1130_v24 = vmul.f32 %v1125_v22, %v1125_v22  ;;  %v1129_v25 = vmul.f32 0.03125, %v1128_v23  ;;  %v1132_v28 = vsub.f32 %v1120_v11, %v1125_v22 }
 0x8e8   : > { %v1131_v26 = vsub.f32 %v1129_v25, %v1130_v24 }
 0x8ea   : > { %v1133_v27 = vadd.f32 1e-05, %v1131_v26 }
 0x8ec   : > { %1661 = vrsqrt.f32 %v1133_v27 }
 0x8f6   : > { %v1662_v29 = vpop.eup %1661 }
 0x8f7   : > { %v1135_v31 = vmul.f32 %v1662_v29, %v1132_v28 }
 0x8f9   : > { %v1142_v32 = vmul.f32 %v1420_v30, %v1135_v31 }
 0x8fb   : > { %v1149_v33 = vadd.f32 %v1421_v2, %v1142_v32 }
 0x8fd   : > { %v1150_v34 = vpack.c.bf16 %v1149_v33, %v1149_v33 }
 0x8ff   : > { %1567 = vmatmul.mubr.bf16.vlgmr.msra.gmra.mrb[20].mxu1 %v1150_v34 }
 0x9d2   : > { %v1256_v36 = vpop.f32.mrb[20].mxu1 }
 0x9d3   : > { %v1257_v37 = vadd.f32 %v1422_v35, %v1256_v36  ;;  %v1568_v38 = vpop.f32.mrb[21].mxu1 }
 0x9d4   : > { %v1259_v39 = vpop.f32.mrb[22].mxu1 }
 0x9d5   : > { %v1262_v20 = vmax.f32 %v1257_v37, 0.0  ;;  %v1569_v40 = vpop.f32.mrb[23].mxu1 }
 0x9d7   : > { %v1263_v41 = vadd.f32 %v1262_v20, %v1149_v33 }
 0x9d9   : > { %1266 = vadd.xlane.f32.xlu0 %v1263_v41  ;;  %v1269_v42 = vmul.f32 %v1263_v41, %v1263_v41 }
 0x9dd   : > { %1270 = vadd.xlane.f32.xlu0 %v1269_v42 }
 0xa66   : > { %v1267_v43 = vpop.xlane.xlu0 %1266 }
 0xa67   : > { %v1268_v44 = vmul.f32 0.03125, %v1267_v43 }
 0xa69   : > { %v1273_v46 = vmul.f32 %v1268_v44, %v1268_v44  ;;  %v1275_v50 = vsub.f32 %v1263_v41, %v1268_v44 }
 0xa6a   : > { %v1271_v45 = vpop.xlane.xlu0 %1270 }
 0xa6b   : > { %v1272_v47 = vmul.f32 0.03125, %v1271_v45 }
 0xa6d   : > { %v1274_v48 = vsub.f32 %v1272_v47, %v1273_v46 }
 0xa6f   : > { %v1276_v49 = vadd.f32 1e-05, %v1274_v48 }
 0xa71   : > { %1663 = vrsqrt.f32 %v1276_v49 }
 0xa7b   : > { %v1664_v51 = vpop.eup %1663 }
 0xa7c   : > { %v1278_v53 = vmul.f32 %v1664_v51, %v1275_v50 }
 0xa7e   : > { %v1285_v55 = vmul.f32 %v1431_v52, %v1278_v53 }
 0xa80   : > { %v1292_v56 = vadd.f32 %v1432_v54, %v1285_v55 }
 0xa82   : > { %1293 = vst [vmem:[%s457_s20] sm:$0xff] %v1292_v56 }
 0xa83   : > { %1678 = shalt.err (!%p1675_p3)
}
 0xa84   : > { %s1679_s0 = scalar_lea.hbm %s2066_s2, 128  ;;  %s1683_s15 = scalar_lea.hbm %s2121_s13, 256 }
 0xa85   : > { %p1680_p4 = scmp.ne.s32.totalorder %s2066_s2, %s1679_s0  ;;  %p1684_p9 = scmp.lt.u32.totalorder %s2066_s2, %s2121_s13 }
 0xa86   : > { %p1685_p10 = scmp.lt.u32.totalorder %s1683_s15, %s1679_s0  ;;  %p1687_p12 = scmp.lt.u32.totalorder %s1679_s0, %s2066_s2 }
 0xa87   : > { %p1681_p7 = pnand %p1680_p4, %p1855_p5 }
 0xa88   : > { %p1686_p11 = por %p1685_p10, %p1684_p9 }
 0xa89   : > { %p1682_p8 = pneg %p1681_p7 }
 0xa8a   : > { %p1688_p13 = por %p1687_p12, %p1686_p11 }
 0xa8c   : > { %p1689_p0 = pnand %p1688_p13, %p1682_p8 }
 0xa8e   : > { %1692 = shalt.err (!%p1689_p0)
}
 0xa8f   : > { %1570 = dma.vmem_to_hbm [thread:$0]  (%p1855_p5), %s2068_s21, 128, %s2066_s2, %s1295_s24  }
 0xa90 PF: > { %p1576_p1 = scmp.ge.s32.totalorder %s1727_s28, 2  ;;  %s1320_s17 = sand.u32 1, %s1715_s25  }
 0xa91   : > { %s1321_s29 = scalar_lea.sflag [#allocation3], %s1320_s17 }
 0xa92   : > { %p1573_p2 = pnand %p1576_p1, %p1859_p6 }
 0xa94   : > { %1710 = dma.done.wait (!%p1573_p2), %s1321_s29, 128  }
 0xa95   : > { %1712 = vsyncadd (!%p1573_p2), %s1321_s29, 4294967168  ;;  %s2131_s23 = sld [smem:[#allocation5_spill]]  ;;  %p23_p3 = scmp.ge.s32.totalorder %s1842_s14, 4  }
 0xa96   : > { %s2132_s25 = smov %s1719_s26  ;;  %s2133_s26 = smov %s1723_s27 }
 0xa97   : > { %s2135_s28 = smov %s1842_s14  ;;  %25 = sbr.rel (!%p23_p3) target bundleno = 7 (0x7), region = 113 }
 0xa9b   : > { %s2134_s27 = smov %s2131_s23 }
 0xa9e   :  { %1326 = vsyncpa [#allocation3], 1 }
 0xa9f   :  { %1328 = vsyncpa [#allocation3 + $0x1], 1 }

</bundles_post_ra>
